<compile_context>
chip_gen: v6e
topology: v6e:2x2x1
jax: 0.10.0
libtpu: 0.0.40
codegen_flags: <defaults>
</compile_context>

<pallas_src>
import functools

import jax
import jax.numpy as jnp
from jax.experimental import pallas as pl
from jax.experimental.pallas import tpu as pltpu


def _round_up(x: int, m: int) -> int:
    return ((x + m - 1) // m) * m


def _arc_kernel(x_ref, w_ref, o_ref, acc_ref):
    """One (tm x tn) output tile for one sub-center kk; max-accumulate over kk."""
    kk = pl.program_id(2)

    x = x_ref[...].astype(jnp.float32)   # (tm, D)
    w = w_ref[0].astype(jnp.float32)     # (tn, D)

    # L2 row-normalization; max(sumsq, 1e-24) reproduces F.normalize's
    # max(||v||, 1e-12) denominator and keeps padded zero-rows NaN-free.
    eps2 = jnp.float32(1e-24)
    xn = x * jax.lax.rsqrt(jnp.maximum(jnp.sum(x * x, axis=-1, keepdims=True), eps2))
    wn = w * jax.lax.rsqrt(jnp.maximum(jnp.sum(w * w, axis=-1, keepdims=True), eps2))

    # Cosine similarities for this sub-center: (tm, D) x (tn, D)^T -> (tm, tn)  (MXU)
    cos = jax.lax.dot_general(
        xn, wn, (((1,), (1,)), ((), ())), preferred_element_type=jnp.float32
    )

    @pl.when(kk == 0)
    def _():
        acc_ref[...] = cos

    @pl.when(kk > 0)
    def _():
        acc_ref[...] = jnp.maximum(acc_ref[...], cos)

    @pl.when(kk == pl.num_programs(2) - 1)
    def _():
        o_ref[...] = acc_ref[...].astype(o_ref.dtype)


@functools.partial(jax.jit, static_argnames=("out_features", "k", "tm", "tn"))
def arc_margin_subcenter(features, weight, *, out_features, k=3, tm=128, tn=256):
    """features: (B, in_features); weight: (out_features*k, in_features) -> (B, out_features)."""
    B, D = features.shape
    CK, D2 = weight.shape
    C = out_features
    assert D == D2 and CK == C * k, "weight must be (out_features*k, in_features)"

    # (C*k, D) -> (k, C, D): row c*k + s is (class c, sub-center s), matching
    # torch's cosine_all.view(-1, out_features, k) column ordering.
    w_kcd = weight.reshape(C, k, D).transpose(1, 0, 2)

    # Tile sizes: large, lane-dense, aligned to (8, 128); pad only if needed.
    tm = min(tm, _round_up(B, 8))
    tn = min(tn, _round_up(C, 128))
    Bp = _round_up(B, tm)
    Cp = _round_up(C, tn)

    x = features
    if Bp != B:
        x = jnp.pad(x, ((0, Bp - B), (0, 0)))
    if Cp != C:
        w_kcd = jnp.pad(w_kcd, ((0, 0), (0, Cp - C), (0, 0)))

    grid = (Bp // tm, Cp // tn, k)

    out = pl.pallas_call(
        _arc_kernel,
        out_shape=jax.ShapeDtypeStruct((Bp, Cp), features.dtype),
        grid_spec=pltpu.PrefetchScalarGridSpec(
            num_scalar_prefetch=0,
            grid=grid,
            in_specs=[
                pl.BlockSpec((tm, D), lambda i, j, kk: (i, 0)),
                pl.BlockSpec((1, tn, D), lambda i, j, kk: (kk, j, 0)),
            ],
            out_specs=pl.BlockSpec((tm, tn), lambda i, j, kk: (i, j)),
            scratch_shapes=[pltpu.VMEM((tm, tn), jnp.float32)],
        ),
        compiler_params=pltpu.CompilerParams(
            dimension_semantics=("parallel", "parallel", "arbitrary"),
        ),
    )(x, w_kcd)

    if Bp != B or Cp != C:
        out = out[:B, :C]
    return out


def arc_margin_subcenter_ref(features, weight, *, out_features, k=3):
    """Pure-JAX reference matching the PyTorch module."""
    def l2norm(v):
        vf = v.astype(jnp.float32)
        n = jnp.sqrt(jnp.sum(vf * vf, axis=-1, keepdims=True))
        return vf / jnp.maximum(n, 1e-12)

    cos_all = l2norm(features) @ l2norm(weight).T            # (B, C*k)
    cos_all = cos_all.reshape(-1, out_features, k)
    return jnp.max(cos_all, axis=2).astype(features.dtype)


if __name__ == "__main__":
    # Small shapes consistent with the module: batch=8, in_features=64,
    # out_features=128, k=3  ->  weight (384, 64), output (8, 128).
    B, D, C, K = 8, 64, 128, 3

    key = jax.random.PRNGKey(0)
    kf, kw = jax.random.split(key)
    features = jax.random.normal(kf, (B, D), dtype=jnp.float32)
    stdv = 1.0 / (D ** 0.5)
    weight = jax.random.uniform(kw, (C * K, D), dtype=jnp.float32,
                                minval=-stdv, maxval=stdv)

    out = arc_margin_subcenter(features, weight, out_features=C, k=K)
    jax.block_until_ready(out)

    ref = arc_margin_subcenter_ref(features, weight, out_features=C, k=K)
    assert out.shape == (B, C) and out.dtype == features.dtype
    assert jnp.allclose(out, ref, atol=3e-5, rtol=1e-4), (
        float(jnp.max(jnp.abs(out - ref)))
    )

    print("KERNEL_OK")
</pallas_src>

<mosaic_0001>
module attributes {stable_mosaic.version = 11 : i64} {
  func.func @_arc_kernel(%arg0: i32, %arg1: i32, %arg2: i32, %arg3: memref<8x64xf32, #tpu.memory_space<vmem>>, %arg4: memref<1x128x64xf32, #tpu.memory_space<vmem>>, %arg5: memref<8x128xf32, #tpu.memory_space<vmem>>, %arg6: memref<8x128xf32, #tpu.memory_space<vmem>>) attributes {dimension_semantics = [#tpu.dimension_semantics<parallel>, #tpu.dimension_semantics<parallel>, #tpu.dimension_semantics<arbitrary>], iteration_bounds = array<i64: 1, 1, 3>, scalar_prefetch = 0 : i64, scratch_operands = 1 : i64, tpu.core_type = #tpu.core_type<tc>, window_params = [{transform_indices = @transform_0, window_bounds = array<i64: 8, 64>}, {transform_indices = @transform_1, window_bounds = array<i64: 1, 128, 64>}, {transform_indices = @transform_2, window_bounds = array<i64: 8, 128>}]} {
    %c0 = arith.constant 0 : index
    %c0_0 = arith.constant 0 : index
    %0 = vector.load %arg3[%c0, %c0_0] : memref<8x64xf32, #tpu.memory_space<vmem>>, vector<8x64xf32>
    %c0_1 = arith.constant 0 : index
    %c0_2 = arith.constant 0 : index
    %c0_3 = arith.constant 0 : index
    %1 = vector.load %arg4[%c0_1, %c0_2, %c0_3] : memref<1x128x64xf32, #tpu.memory_space<vmem>>, vector<1x128x64xf32>
    %2 = vector.shape_cast %1 : vector<1x128x64xf32> to vector<128x64xf32>
    %3 = arith.mulf %0, %0 : vector<8x64xf32>
    %cst = arith.constant dense<0.000000e+00> : vector<8xf32>
    %4 = vector.multi_reduction <add>, %3, %cst [1] : vector<8x64xf32> to vector<8xf32>
    %5 = vector.shape_cast %4 : vector<8xf32> to vector<8x1xf32>
    %cst_4 = arith.constant 1.000000e-24 : f32
    %6 = vector.broadcast %cst_4 : f32 to vector<8x1xf32>
    %7 = arith.maximumf %5, %6 : vector<8x1xf32>
    %8 = math.rsqrt %7 : vector<8x1xf32>
    %9 = vector.broadcast %8 : vector<8x1xf32> to vector<8x64xf32>
    %10 = arith.mulf %0, %9 : vector<8x64xf32>
    %11 = arith.mulf %2, %2 : vector<128x64xf32>
    %cst_5 = arith.constant dense<0.000000e+00> : vector<128xf32>
    %12 = vector.multi_reduction <add>, %11, %cst_5 [1] : vector<128x64xf32> to vector<128xf32>
    %13 = vector.shape_cast %12 : vector<128xf32> to vector<128x1xf32>
    %cst_6 = arith.constant 1.000000e-24 : f32
    %14 = vector.broadcast %cst_6 : f32 to vector<128x1xf32>
    %15 = arith.maximumf %13, %14 : vector<128x1xf32>
    %16 = math.rsqrt %15 : vector<128x1xf32>
    %17 = vector.broadcast %16 : vector<128x1xf32> to vector<128x64xf32>
    %18 = arith.mulf %2, %17 : vector<128x64xf32>
    %cst_7 = arith.constant dense<0.000000e+00> : vector<8x128xf32>
    %19 = tpu.matmul %10, %18, %cst_7 {dimension_numbers = #tpu.dot_dimension_numbers<[1], [1], [0], [0], [0, 0, 1, 0], [], []>} : vector<8x64xf32>, vector<128x64xf32>, vector<8x128xf32> -> vector<8x128xf32>
    %c0_i32 = arith.constant 0 : i32
    %20 = arith.cmpi eq, %arg2, %c0_i32 : i32
    %21 = arith.extui %20 : i1 to i32
    %c0_i32_8 = arith.constant 0 : i32
    %22 = arith.cmpi ne, %21, %c0_i32_8 : i32
    scf.if %22 {
      %c0_12 = arith.constant 0 : index
      %c0_13 = arith.constant 0 : index
      %29 = vector.load %arg6[%c0_12, %c0_13] : memref<8x128xf32, #tpu.memory_space<vmem>>, vector<8x128xf32>
      tpu.vector_store %arg6[%c0_12, %c0_13], %19 {strides = array<i32>} : memref<8x128xf32, #tpu.memory_space<vmem>>, vector<8x128xf32>,
    } else {
    }
    %c0_i32_9 = arith.constant 0 : i32
    %23 = arith.cmpi sgt, %arg2, %c0_i32_9 : i32
    %24 = arith.extui %23 : i1 to i32
    %c0_i32_10 = arith.constant 0 : i32
    %25 = arith.cmpi ne, %24, %c0_i32_10 : i32
    scf.if %25 {
      %c0_12 = arith.constant 0 : index
      %c0_13 = arith.constant 0 : index
      %29 = vector.load %arg6[%c0_12, %c0_13] : memref<8x128xf32, #tpu.memory_space<vmem>>, vector<8x128xf32>
      %30 = arith.maximumf %29, %19 : vector<8x128xf32>
      %c0_14 = arith.constant 0 : index
      %c0_15 = arith.constant 0 : index
      %31 = vector.load %arg6[%c0_14, %c0_15] : memref<8x128xf32, #tpu.memory_space<vmem>>, vector<8x128xf32>
      tpu.vector_store %arg6[%c0_14, %c0_15], %30 {strides = array<i32>} : memref<8x128xf32, #tpu.memory_space<vmem>>, vector<8x128xf32>,
    } else {
    }
    %c2_i32 = arith.constant 2 : i32
    %26 = arith.cmpi eq, %arg2, %c2_i32 : i32
    %27 = arith.extui %26 : i1 to i32
    %c0_i32_11 = arith.constant 0 : i32
    %28 = arith.cmpi ne, %27, %c0_i32_11 : i32
    scf.if %28 {
      %c0_12 = arith.constant 0 : index
      %c0_13 = arith.constant 0 : index
      %29 = vector.load %arg6[%c0_12, %c0_13] : memref<8x128xf32, #tpu.memory_space<vmem>>, vector<8x128xf32>
      %c0_14 = arith.constant 0 : index
      %c0_15 = arith.constant 0 : index
      %30 = vector.load %arg5[%c0_14, %c0_15] : memref<8x128xf32, #tpu.memory_space<vmem>>, vector<8x128xf32>
      tpu.vector_store %arg5[%c0_14, %c0_15], %29 {strides = array<i32>} : memref<8x128xf32, #tpu.memory_space<vmem>>, vector<8x128xf32>,
    } else {
    }
    return
  }
  func.func @transform_0(%arg0: i32, %arg1: i32, %arg2: i32) -> (i32, i32) {
    %c0_i32 = arith.constant 0 : i32
    %c0_i32_0 = arith.constant 0 : i32
    return %arg0, %c0_i32 : i32, i32
  }
  func.func @transform_1(%arg0: i32, %arg1: i32, %arg2: i32) -> (i32, i32, i32) {
    %c0_i32 = arith.constant 0 : i32
    %c0_i32_0 = arith.constant 0 : i32
    return %arg2, %arg1, %c0_i32 : i32, i32, i32
  }
  func.func @transform_2(%arg0: i32, %arg1: i32, %arg2: i32) -> (i32, i32) {
    %c0_i32 = arith.constant 0 : i32
    return %arg0, %arg1 : i32, i32
  }
}

</mosaic_0001>

<bundles_post_ra>
// kernel: arc_margin_subcenter.1
= control target key start
LH: loop header
LB: loop body
LE: loop exit
PB: predicated region body
PF: predicated region fallthrough
CT: control target
= control target key end

     0   :  { %7 = vsyncpa [#allocation4], 0  ;;  %s771_s9 = smov 0   ;;  %s773_s10 = smov 0   ;;  %s983_s0 = inlined_call_operand.vmem [shape: f32[8,64], index: 0, kind: input, shape index: {}]   ;;  %s984_s1 = inlined_call_operand.vmem [shape: f32[3,128,64], index: 1, kind: input, shape index: {}]   ;;  %s985_s2 = inlined_call_operand.hbm [shape: f32[8,128], index: 2, kind: output, shape index: {}]  }
   0x1   :  { %s775_s11 = smov 0  }
   0x2 LB: > { %s550_s12 = sadd.s32 4294967295, %s751_s11   ;;  %s25_s13 = sadd.s32 1, %s747_s10  ;;  %s751_s11 = sphi %s775_s11, %s13_s11   ;;  %s747_s10 = sphi %s773_s10, %s988_s10   ;;  %s743_s9 = sphi %s771_s9, %s987_s9  }
   0x3   : > { %p26_p0 = scmp.ge.s32.totalorder %s25_s13, 3  ;;  %p554_p1 = scmp.ge.s32.totalorder %s751_s11, 1 }
   0x4   : > { %p150_p2 = scmp.lt.s32.totalorder %s751_s11, 4 }
   0x5   : > { %s990_s13 = smov (%p26_p0, %s25_s13), 0 }
   0x6   : > { %p151_p3 = pnand %p554_p1, %p150_p2 }
   0x7   : > { %p180_p4 = scmp.lt.s32.totalorder (!%p151_p3), %s743_s9, 2  ;;  %p574_p5 = scmp.ne.s32.totalorder (!%p151_p3), %s743_s9, 0 }
   0x8   : > { %154 = sbr.rel (%p151_p3) target bundleno = 471 (0x1d7), region = 28 }
   0xd   : > { %s181_s14 = scalar_select %p180_p4, %s743_s9, 2  ;;  %vm207_vm0 = vcmask 523264   ;;  %v753_v46 = vmov 0.0   ;;  %v897_v47 = vld [vmem:[%s983_s0] sm:$0xff]  ;;  %vm754_vm1 = vmmov 0  }
   0xe   : > { %599 = vmatprep.subr.mxu0 %v753_v46  ;;  %v206_v50 = vmul.f32 %v897_v47, %v897_v47  ;;  %631 = vmatprep.mubr.msk.f32.mxu0 %vm754_vm1, %v753_v46 }
   0xf   : > { %s581_s15 = sshll.u32 %s181_s14, 7 }
  0x10   : > { %s797_s18 = scalar_lea.vmem %s984_s1, %s581_s15  ;;  %v208_v51 = vsel %vm207_vm0, %v206_v50, 0.0 }
  0x11   : > { %v800_v0 = vld [vmem:[%s797_s18 + $0x78] sm:$0xff]  ;;  %v803_v1 = vld [vmem:[%s797_s18 + $0x70] sm:$0xff]  ;;  %v806_v2 = vld [vmem:[%s797_s18 + $0x68] sm:$0xff] }
  0x12   : > { %v229_v3 = vmul.f32 %v800_v0, %v800_v0  ;;  %v228_v4 = vmul.f32 %v803_v1, %v803_v1  ;;  %v227_v5 = vmul.f32 %v806_v2, %v806_v2  ;;  %v815_v6 = vld [vmem:[%s797_s18 + $0x60] sm:$0xff]  ;;  %v820_v8 = vld [vmem:[%s797_s18 + $0x58] sm:$0xff]  ;;  %v823_v9 = vld [vmem:[%s797_s18 + $0x50] sm:$0xff] }
  0x13   : > { %v226_v7 = vmul.f32 %v815_v6, %v815_v6  ;;  %v225_v14 = vmul.f32 %v820_v8, %v820_v8  ;;  %v224_v15 = vmul.f32 %v823_v9, %v823_v9  ;;  %v834_v16 = vld [vmem:[%s797_s18 + $0x48] sm:$0xff]  ;;  %v837_v17 = vld [vmem:[%s797_s18 + $0x40] sm:$0xff]  ;;  %v846_v22 = vld [vmem:[%s797_s18 + $0x38] sm:$0xff] }
  0x14   : > { %v275_v10 = vsel %vm207_vm0, %v229_v3, 0.0  ;;  %v269_v11 = vsel %vm207_vm0, %v227_v5, 0.0  ;;  %v272_v12 = vsel %vm207_vm0, %v228_v4, 0.0  ;;  %v223_v20 = vmul.f32 %v834_v16, %v834_v16  ;;  %v849_v23 = vld [vmem:[%s797_s18 + $0x30] sm:$0xff]  ;;  %v858_v28 = vld [vmem:[%s797_s18 + $0x28] sm:$0xff]  ;;  %v861_v29 = vld [vmem:[%s797_s18 + $0x20] sm:$0xff] }
  0x15   : > { %276 = vadd.xlane.f32.xlu0 %v275_v10  ;;  %270 = vadd.xlane.f32.xlu1 %v269_v11  ;;  %v266_v13 = vsel %vm207_vm0, %v226_v7, 0.0  ;;  %v263_v18 = vsel %vm207_vm0, %v225_v14, 0.0  ;;  %v260_v19 = vsel %vm207_vm0, %v224_v15, 0.0  ;;  %v222_v21 = vmul.f32 %v837_v17, %v837_v17  ;;  %v870_v34 = vld [vmem:[%s797_s18 + $0x18] sm:$0xff]  ;;  %v873_v35 = vld [vmem:[%s797_s18 + $0x10] sm:$0xff]  ;;  %v882_v40 = vld [vmem:[%s797_s18 + $0x8] sm:$0xff] }
  0x16   : > { %v257_v24 = vsel %vm207_vm0, %v223_v20, 0.0  ;;  %v221_v26 = vmul.f32 %v846_v22, %v846_v22  ;;  %v220_v27 = vmul.f32 %v849_v23, %v849_v23  ;;  %v219_v32 = vmul.f32 %v858_v28, %v858_v28  ;;  %v885_v41 = vld [vmem:[%s797_s18] sm:$0xff] }
  0x17   : > { %v254_v25 = vsel %vm207_vm0, %v222_v21, 0.0  ;;  %v218_v33 = vmul.f32 %v861_v29, %v861_v29  ;;  %v217_v38 = vmul.f32 %v870_v34, %v870_v34  ;;  %v216_v39 = vmul.f32 %v873_v35, %v873_v35 }
  0x18   : > { %v251_v30 = vsel %vm207_vm0, %v221_v26, 0.0  ;;  %v248_v31 = vsel %vm207_vm0, %v220_v27, 0.0  ;;  %v245_v36 = vsel %vm207_vm0, %v219_v32, 0.0  ;;  %v215_v44 = vmul.f32 %v882_v40, %v882_v40 }
  0x19   : > { %273 = vadd.xlane.f32.xlu0 %v272_v12  ;;  %267 = vadd.xlane.f32.xlu1 %v266_v13  ;;  %v242_v37 = vsel %vm207_vm0, %v218_v33, 0.0  ;;  %v239_v42 = vsel %vm207_vm0, %v217_v38, 0.0  ;;  %v236_v43 = vsel %vm207_vm0, %v216_v39, 0.0  ;;  %v214_v45 = vmul.f32 %v885_v41, %v885_v41 }
  0x1a   : > { %v233_v48 = vsel %vm207_vm0, %v215_v44, 0.0 }
  0x1b   : > { %v230_v49 = vsel %vm207_vm0, %v214_v45, 0.0 }
  0x1d   : > { %264 = vadd.xlane.f32.xlu0 %v263_v18  ;;  %261 = vadd.xlane.f32.xlu1 %v260_v19 }
  0x21   : > { %258 = vadd.xlane.f32.xlu0 %v257_v24  ;;  %255 = vadd.xlane.f32.xlu1 %v254_v25 }
  0x25   : > { %252 = vadd.xlane.f32.xlu0 %v251_v30  ;;  %249 = vadd.xlane.f32.xlu1 %v248_v31 }
  0x29   : > { %246 = vadd.xlane.f32.xlu0 %v245_v36  ;;  %243 = vadd.xlane.f32.xlu1 %v242_v37 }
  0x2d   : > { %240 = vadd.xlane.f32.xlu0 %v239_v42  ;;  %237 = vadd.xlane.f32.xlu1 %v236_v43 }
  0x31   : > { %234 = vadd.xlane.f32.xlu0 %v233_v48  ;;  %231 = vadd.xlane.f32.xlu1 %v230_v49 }
  0x35   : > { %209 = vadd.xlane.f32.xlu0 %v208_v51 }
  0x9e   : > { %v277_v52 = vpop.xlane.xlu0 %276  ;;  %v271_v53 = vpop.xlane.xlu1 %270 }
  0x9f   : > { %v293_v54 = vmax.f32 %v277_v52, 1e-24  ;;  %v291_v55 = vmax.f32 %v271_v53, 1e-24 }
  0xa1   : > { %667 = vrsqrt.f32 %v293_v54 }
  0xa2   : > { %v274_v56 = vpop.xlane.xlu0 %273  ;;  %v268_v57 = vpop.xlane.xlu1 %267  ;;  %669 = vrsqrt.f32 %v291_v55 }
  0xa3   : > { %v292_v58 = vmax.f32 %v274_v56, 1e-24  ;;  %v290_v59 = vmax.f32 %v268_v57, 1e-24 }
  0xa5   : > { %671 = vrsqrt.f32 %v292_v58 }
  0xa6   : > { %v265_v60 = vpop.xlane.xlu0 %264  ;;  %673 = vrsqrt.f32 %v290_v59  ;;  %v262_v62 = vpop.xlane.xlu1 %261 }
  0xa7   : > { %v289_v61 = vmax.f32 %v265_v60, 1e-24  ;;  %v288_v63 = vmax.f32 %v262_v62, 1e-24 }
  0xa9   : > { %675 = vrsqrt.f32 %v289_v61 }
  0xaa   : > { %v259_v4 = vpop.xlane.xlu0 %258  ;;  %677 = vrsqrt.f32 %v288_v63  ;;  %v256_v12 = vpop.xlane.xlu1 %255 }
  0xab   : > { %v287_v10 = vmax.f32 %v259_v4, 1e-24  ;;  %v286_v15 = vmax.f32 %v256_v12, 1e-24 }
  0xad   : > { %679 = vrsqrt.f32 %v287_v10 }
  0xae   : > { %v668_v3 = vpop.eup %667  ;;  %681 = vrsqrt.f32 %v286_v15 }
  0xaf   : > { %v325_v5 = vmul.f32 %v668_v3, %v800_v0  ;;  %v670_v7 = vpop.eup %669  ;;  %v253_v0 = vpop.xlane.xlu0 %252 }
  0xb0   : > { %v323_v14 = vmul.f32 %v670_v7, %v806_v2  ;;  %v285_v20 = vmax.f32 %v253_v0, 1e-24 }
  0xb1   : > { %600 = vmatpush3.xpose.msk.msra.mxu0 %vm207_vm0, %v325_v5 }
  0xb2   : > { %v672_v11 = vpop.eup %671  ;;  %601 = vmatprep.subr.mxu0 %v753_v46  ;;  %683 = vrsqrt.f32 %v285_v20 }
  0xb3   : > { %v324_v13 = vmul.f32 %v672_v11, %v803_v1  ;;  %v674_v18 = vpop.eup %673  ;;  %v250_v1 = vpop.xlane.xlu1 %249 }
  0xb4   : > { %v322_v19 = vmul.f32 %v674_v18, %v815_v6  ;;  %v284_v24 = vmax.f32 %v250_v1, 1e-24  ;;  %v247_v26 = vpop.xlane.xlu0 %246 }
  0xb5   : > { %602 = vmatpush3.xpose.msk.msra.mxu0 %vm207_vm0, %v324_v13  ;;  %v283_v27 = vmax.f32 %v247_v26, 1e-24 }
  0xb6   : > { %603 = vmatprep.subr.mxu0 %v753_v46  ;;  %v676_v21 = vpop.eup %675  ;;  %685 = vrsqrt.f32 %v284_v24 }
  0xb7   : > { %v321_v2 = vmul.f32 %v676_v21, %v820_v8  ;;  %v678_v25 = vpop.eup %677  ;;  %v244_v31 = vpop.xlane.xlu1 %243  ;;  %687 = vrsqrt.f32 %v283_v27 }
  0xb8   : > { %v320_v6 = vmul.f32 %v678_v25, %v823_v9  ;;  %v282_v32 = vmax.f32 %v244_v31, 1e-24  ;;  %v241_v36 = vpop.xlane.xlu0 %240 }
  0xb9   : > { %604 = vmatpush3.xpose.msk.msra.mxu0 %vm207_vm0, %v323_v14  ;;  %v281_v37 = vmax.f32 %v241_v36, 1e-24 }
  0xba   : > { %605 = vmatprep.subr.mxu0 %v753_v46  ;;  %v680_v30 = vpop.eup %679  ;;  %689 = vrsqrt.f32 %v282_v32 }
  0xbb   : > { %v319_v8 = vmul.f32 %v680_v30, %v834_v16  ;;  %v682_v33 = vpop.eup %681  ;;  %v238_v39 = vpop.xlane.xlu1 %237  ;;  %691 = vrsqrt.f32 %v281_v37 }
  0xbc   : > { %v318_v9 = vmul.f32 %v682_v33, %v837_v17  ;;  %v280_v42 = vmax.f32 %v238_v39, 1e-24  ;;  %v235_v44 = vpop.xlane.xlu0 %234 }
  0xbd   : > { %606 = vmatpush3.xpose.msk.msra.mxu0 %vm207_vm0, %v322_v19  ;;  %v279_v45 = vmax.f32 %v235_v44, 1e-24 }
  0xbe   : > { %607 = vmatprep.subr.mxu0 %v753_v46  ;;  %693 = vrsqrt.f32 %v280_v42 }
  0xbf   : > { %v684_v38 = vpop.eup %683  ;;  %v232_v49 = vpop.xlane.xlu1 %231  ;;  %695 = vrsqrt.f32 %v279_v45 }
  0xc0   : > { %v317_v16 = vmul.f32 %v684_v38, %v846_v22  ;;  %v278_v50 = vmax.f32 %v232_v49, 1e-24  ;;  %v210_v51 = vpop.xlane.xlu0 %209 }
  0xc1   : > { %608 = vmatpush3.xpose.msk.msra.mxu0 %vm207_vm0, %v321_v2  ;;  %v211_v53 = vmax.f32 %v210_v51, 1e-24 }
  0xc2   : > { %609 = vmatprep.subr.mxu0 %v753_v46  ;;  %697 = vrsqrt.f32 %v278_v50 }
  0xc3   : > { %v686_v43 = vpop.eup %685  ;;  %699 = vrsqrt.f32 %v211_v53 }
  0xc4   : > { %v316_v17 = vmul.f32 %v686_v43, %v849_v23  ;;  %v688_v48 = vpop.eup %687 }
  0xc5   : > { %610 = vmatpush3.xpose.msk.msra.mxu0 %vm207_vm0, %v320_v6  ;;  %v315_v22 = vmul.f32 %v688_v48, %v858_v28 }
  0xc6   : > { %611 = vmatprep.subr.mxu0 %v753_v46 }
  0xc7   : > { %v690_v52 = vpop.eup %689 }
  0xc8   : > { %v314_v23 = vmul.f32 %v690_v52, %v861_v29  ;;  %v692_v54 = vpop.eup %691 }
  0xc9   : > { %612 = vmatpush3.xpose.msk.msra.mxu0 %vm207_vm0, %v319_v8  ;;  %v313_v55 = vmul.f32 %v692_v54, %v870_v34 }
  0xca   : > { %613 = vmatprep.subr.mxu0 %v753_v46 }
  0xcb   : > { %v694_v28 = vpop.eup %693 }
  0xcc   : > { %v312_v56 = vmul.f32 %v694_v28, %v873_v35  ;;  %v696_v57 = vpop.eup %695 }
  0xcd   : > { %614 = vmatpush3.xpose.msk.msra.mxu0 %vm207_vm0, %v318_v9  ;;  %v311_v29 = vmul.f32 %v696_v57, %v882_v40 }
  0xce   : > { %615 = vmatprep.subr.mxu0 %v753_v46 }
  0xcf   : > { %v698_v58 = vpop.eup %697 }
  0xd0   : > { %v700_v59 = vpop.eup %699  ;;  %v310_v34 = vmul.f32 %v698_v58, %v885_v41 }
  0xd1   : > { %616 = vmatpush3.xpose.msk.msra.mxu0 %vm207_vm0, %v317_v16  ;;  %v213_v60 = vmul.f32 %v700_v59, %v897_v47 }
  0xd2   : > { %617 = vmatprep.subr.mxu0 %v753_v46 }
  0xd5   : > { %618 = vmatpush3.xpose.msk.msra.mxu0 %vm207_vm0, %v316_v17 }
  0xd6   : > { %619 = vmatprep.subr.mxu0 %v753_v46 }
  0xd9   : > { %620 = vmatpush3.xpose.msk.msra.mxu0 %vm207_vm0, %v315_v22 }
  0xda   : > { %621 = vmatprep.subr.mxu0 %v753_v46 }
  0xdd   : > { %622 = vmatpush3.xpose.msk.msra.mxu0 %vm207_vm0, %v314_v23 }
  0xde   : > { %623 = vmatprep.subr.mxu0 %v753_v46 }
  0xe1   : > { %624 = vmatpush3.xpose.msk.msra.mxu0 %vm207_vm0, %v313_v55 }
  0xe2   : > { %625 = vmatprep.subr.mxu0 %v753_v46 }
  0xe5   : > { %626 = vmatpush3.xpose.msk.msra.mxu0 %vm207_vm0, %v312_v56 }
  0xe6   : > { %627 = vmatprep.subr.mxu0 %v753_v46 }
  0xe9   : > { %628 = vmatpush3.xpose.msk.msra.mxu0 %vm207_vm0, %v311_v29 }
  0xea   : > { %629 = vmatprep.subr.mxu0 %v753_v46 }
  0xed   : > { %630 = vmatpush3.xpose.msk.msra.mxu0 %vm207_vm0, %v310_v34 }
  0xf0   : > { %632 = vmatmul.mubr.msk.f32.vlgmr.msra.gmra.mxu0 %vm207_vm0, %v213_v60 }
 0x1ae   : > { %450 = sbr.rel (%p574_p5) target bundleno = 436 (0x1b4), region = 32 }
 0x1b0   : > { %v443_v35 = vpop.f32.mrf.mxu0 }
 0x1b2   : > { %v633_v61 = vpop.f32.mrf.mxu0 }
 0x1b3   : > { %451 = vst [vmem:[#allocation2] sm:$0xff] %v443_v35 }
 0x1b4 PF: > { %p575_p6 = scmp.le.s32.totalorder %s743_s9, 0 }
 0x1b6   : > { %455 = sbr.rel (%p575_p6) target bundleno = 447 (0x1bf), region = 36 }
 0x1bb   : > { %v456_v40 = vld [vmem:[#allocation2] sm:$0xff] }
 0x1bc   : > { %v457_v41 = vmax.f32 %v456_v40, %v443_v35 }
 0x1be   : > { %458 = vst [vmem:[#allocation2] sm:$0xff] %v457_v41 }
 0x1bf PF: > { %p576_p7 = scmp.ne.s32.totalorder %s743_s9, 2 }
 0x1c1   : > { %462 = sbr.rel (%p576_p7) target bundleno = 456 (0x1c8), region = 40 }
 0x1c6   : > { %v463_v46 = vld [vmem:[#allocation2] sm:$0xff] }
 0x1c7   : > { %464 = vst [vmem:[#allocation3] sm:$0xff] %v463_v46 }
 0x1c8 PF: > { %p959_p8 = scmp.eq.s32.totalorder %s550_s12, 2  ;;  %s755_s22 = smov [#allocation3]  }
 0x1c9   : > { %s475_s23 = sshll.u32 %s755_s22, 4  ;;  %s476_s23 = int_to_ptr.vmem [resolvable:$true] %s475_s23 }
 0x1ca   : > { %s701_s24 = scalar_lea.vmem %s476_s23, 128  ;;  %p708_p12 = scmp.lt.s32.totalorder %s476_s23, %s476_s23 }
 0x1cb   : > { %p702_p9 = scmp.ne.s32.totalorder %s476_s23, %s701_s24  ;;  %p709_p13 = scmp.lt.s32.totalorder %s701_s24, %s701_s24 }
 0x1cd   : > { %p703_p10 = pnand %p702_p9, %p959_p8  ;;  %p710_p0 = por %p709_p13, %p708_p12 }
 0x1cf   : > { %p704_p11 = pneg %p703_p10 }
 0x1d1   : > { %p711_p1 = pnand %p710_p0, %p704_p11 }
 0x1d3   : > { %714 = shalt.err (!%p711_p1)
}
 0x1d4   : > { %635 = dma.vmem_to_hbm [thread:$0]  (%p959_p8), %s476_s23, 128, %s985_s2, [#allocation4]  }
 0x1d5   : > { %738 = dma.done.wait (%p959_p8), [#allocation4], 128  }
 0x1d6   : > { %740 = vsyncadd (%p959_p8), [#allocation4], 4294967168 }
 0x1d7 PF: > { %s13_s11 = sadd.s32 1, %s751_s11   ;;  %s987_s9 = smov %s747_s10 }
 0x1d8   : > { %p10_p2 = scmp.ge.s32.totalorder %s13_s11, 5   ;;  %s988_s10 = smov %s990_s13 }
 0x1da   :  { %12 = sbr.rel (!%p10_p2) target bundleno = 2 (0x2), region = 71 }
 0x1df   :  { %488 = vsyncpa [#allocation4], 1 }
 0x1e0   :  { %490 = vsyncpa [#allocation4 + $0x1], 1 }

</bundles_post_ra>
